<compile_context>
chip_gen: v7x
topology: tpu7x:2x2x1
jax: 0.10.0
libtpu: 0.0.40
codegen_flags: <defaults>
</compile_context>

<pallas_src>
import math

import jax
import jax.numpy as jnp
from jax.experimental import pallas as pl
from jax.experimental.pallas import tpu as pltpu

_INV_SQRT2 = 1.0 / math.sqrt(2.0)


def _round_up(x, m):
    return ((x + m - 1) // m) * m


def _gelu_exact(g):
    # torch.nn.functional.gelu default (erf form).
    return 0.5 * g * (1.0 + jax.lax.erf(g * _INV_SQRT2))


# --------------------------------------------------------------------------- kernels

def _ff_kernel_resident(x_ref, w1_ref, b1_ref, w2_ref, b2_ref, o_ref):
    """Single hidden chunk: whole (padded) hidden dim resident in VMEM.

    x_ref:  (tm, dim_p)
    w1_ref: (dim_p, 2*hc)   [value | gate] columns         b1_ref: (1, 2*hc) f32
    w2_ref: (hc, dim_p)                                    b2_ref: (1, dim_p) f32
    """
    hc = w2_ref.shape[0]
    h = jnp.dot(x_ref[...], w1_ref[...], preferred_element_type=jnp.float32)
    h = h + b1_ref[...]
    a, g = h[:, :hc], h[:, hc:]
    inner = a * _gelu_exact(g)
    y = jnp.dot(inner.astype(w2_ref.dtype), w2_ref[...],
                preferred_element_type=jnp.float32)
    o_ref[...] = (y + b2_ref[...]).astype(o_ref.dtype)


def _ff_kernel_acc(x_ref, w1_ref, b1_ref, w2_ref, b2_ref, o_ref, acc_ref):
    """Multi hidden chunk: grid=(row_tiles, k); f32 accumulator over the k axis."""
    k = pl.program_id(1)

    @pl.when(k == 0)
    def _():
        acc_ref[...] = jnp.zeros_like(acc_ref)

    hc = w2_ref.shape[0]
    h = jnp.dot(x_ref[...], w1_ref[...], preferred_element_type=jnp.float32)
    h = h + b1_ref[...]
    a, g = h[:, :hc], h[:, hc:]
    inner = a * _gelu_exact(g)
    acc_ref[...] += jnp.dot(inner.astype(w2_ref.dtype), w2_ref[...],
                            preferred_element_type=jnp.float32)

    @pl.when(k == pl.num_programs(1) - 1)
    def _():
        o_ref[...] = (acc_ref[...] + b2_ref[...]).astype(o_ref.dtype)


# ----------------------------------------------------------------- hardware heuristics

def _hw_info():
    """(per-core VMEM bytes, lane granule, has 2 TensorCores). Conservative fallbacks."""
    vmem_cap = 64 * 1024 * 1024
    kind = ""
    try:
        info = pltpu.get_tpu_info()
        vmem_cap = int(getattr(info, "vmem_capacity_bytes", vmem_cap))
    except Exception:
        pass
    try:
        kind = jax.devices()[0].device_kind.lower()
    except Exception:
        pass
    # 2x256x256 MXU on v6e/v7x -> pad K/N to 256; keep 128 elsewhere (v5e: 4x128x128).
    lane = 256 if ("v6" in kind or "v7" in kind or "7x" in kind) else 128
    two_cores = ("v7" in kind) or ("7x" in kind)
    return vmem_cap, lane, two_cores


def _vmem_estimate(tm, dim_p, hc, nk, in_bytes, out_bytes):
    """Double-buffered inputs + output (+ f32 acc scratch when nk > 1)."""
    x_b = 2 * tm * dim_p * in_bytes
    w1_b = 2 * dim_p * (2 * hc) * in_bytes
    w2_b = 2 * hc * dim_p * in_bytes
    b_b = 2 * 8 * (2 * hc + dim_p) * 4          # biases, f32, sublane-padded
    o_b = 2 * tm * dim_p * out_bytes
    acc_b = tm * dim_p * 4 if nk > 1 else 0
    return x_b + w1_b + w2_b + b_b + o_b + acc_b


# --------------------------------------------------------------------------- wrapper

def feedforward(x, w1, b1, w2, b2, *, mxu_dtype=None, tm=None, hc=None):
    """x: (batch, seq, dim). w1: (dim, 2*hidden), b1: (2*hidden,), w2: (hidden, dim), b2: (dim,).

    mxu_dtype: optional dtype (e.g. jnp.bfloat16) for MXU operands (f32 accumulation kept).
    tm / hc:   optional manual overrides for the row tile / hidden chunk.
    """
    batch, seq, dim = x.shape
    hidden = w1.shape[1] // 2
    assert w1.shape == (dim, 2 * hidden)
    assert b1.shape == (2 * hidden,)
    assert w2.shape == (hidden, dim)
    assert b2.shape == (dim,)

    vmem_cap, lane, two_cores = _hw_info()
    vmem_limit = int(vmem_cap * 0.78)           # ~100 MiB on 128 MiB parts, ~50 MiB on v7x
    data_budget = int(vmem_limit * 0.8)         # ~20% headroom under the scoped limit

    out_dtype = x.dtype
    op_dtype = jnp.dtype(mxu_dtype) if mxu_dtype is not None else jnp.dtype(x.dtype)
    in_bytes = op_dtype.itemsize
    out_bytes = jnp.dtype(out_dtype).itemsize
    granule = 16 if in_bytes < 4 else 8         # sublane packing granule

    # Lane-dense padded sizes (zero padding keeps the math exact).
    dim_p = _round_up(dim, lane)
    hidden_p = _round_up(hidden, lane)

    M = batch * seq

    # ---- row tile: as big as VMEM allows, dividing M tightly (no mostly-padded tail) ----
    tm_max = tm if tm is not None else (1024 if vmem_cap >= 96 * 1024 * 1024 else 512)
    n_row = max(1, pl.cdiv(M, tm_max))
    if two_cores and n_row < 2 and M > granule:
        n_row = 2                               # v7x: keep both TensorCores busy
    tm_sel = _round_up(pl.cdiv(M, n_row), granule)

    # ---- hidden chunk: prefer fully-resident weights (hc == hidden_p) ----
    if hc is not None:
        hc_sel = min(_round_up(hc, 128), hidden_p)
        hidden_pp = _round_up(hidden_p, hc_sel)
        nk = hidden_pp // hc_sel
    else:
        hc_sel, nk, hidden_pp = hidden_p, 1, hidden_p
        while (_vmem_estimate(tm_sel, dim_p, hc_sel, nk, in_bytes, out_bytes) > data_budget
               and hc_sel > lane):
            nk *= 2
            hc_sel = _round_up(pl.cdiv(hidden_p, nk), lane)
            hidden_pp = hc_sel * nk
        # Still over budget -> shrink the row tile (never dim_p / the output lane width).
        while (_vmem_estimate(tm_sel, dim_p, hc_sel, nk, in_bytes, out_bytes) > data_budget
               and tm_sel > granule):
            tm_sel = max(granule, _round_up(tm_sel // 2, granule))

    n_row = pl.cdiv(M, tm_sel)
    Mp = n_row * tm_sel

    # ---- host-side padding / layout prep (cheap XLA ops; pre-do once in a real model) ----
    x2 = x.reshape(M, dim)
    if op_dtype != x2.dtype:
        x2 = x2.astype(op_dtype)
    x2 = jnp.pad(x2, ((0, Mp - M), (0, dim_p - dim)))

    w1v = jnp.pad(w1[:, :hidden].astype(op_dtype),
                  ((0, dim_p - dim), (0, hidden_pp - hidden)))
    w1g = jnp.pad(w1[:, hidden:].astype(op_dtype),
                  ((0, dim_p - dim), (0, hidden_pp - hidden)))
    # Per-chunk [value | gate] interleave: chunk k occupies columns [k*2*hc, (k+1)*2*hc).
    w1cat = jnp.stack(
        [w1v.reshape(dim_p, nk, hc_sel), w1g.reshape(dim_p, nk, hc_sel)], axis=2
    ).reshape(dim_p, nk * 2 * hc_sel)

    b1v = jnp.pad(b1[:hidden].astype(jnp.float32), (0, hidden_pp - hidden))
    b1g = jnp.pad(b1[hidden:].astype(jnp.float32), (0, hidden_pp - hidden))
    b1cat = jnp.stack(
        [b1v.reshape(nk, hc_sel), b1g.reshape(nk, hc_sel)], axis=1
    ).reshape(1, nk * 2 * hc_sel)

    w2p = jnp.pad(w2.astype(op_dtype), ((0, hidden_pp - hidden), (0, dim_p - dim)))
    b2p = jnp.pad(b2.astype(jnp.float32), (0, dim_p - dim)).reshape(1, dim_p)

    cparams = pltpu.CompilerParams(
        dimension_semantics=("parallel",) if nk == 1 else ("parallel", "arbitrary"),
        vmem_limit_bytes=vmem_limit,
    )

    if nk == 1:
        # Weight block index constant across the grid -> weights DMA'd from HBM once total.
        out2 = pl.pallas_call(
            _ff_kernel_resident,
            out_shape=jax.ShapeDtypeStruct((Mp, dim_p), out_dtype),
            grid_spec=pltpu.PrefetchScalarGridSpec(
                num_scalar_prefetch=0,
                grid=(n_row,),
                in_specs=[
                    pl.BlockSpec((tm_sel, dim_p), lambda i: (i, 0)),        # x row tile
                    pl.BlockSpec((dim_p, 2 * hc_sel), lambda i: (0, 0)),    # W1 [val|gate]
                    pl.BlockSpec((1, 2 * hc_sel), lambda i: (0, 0)),        # b1 (f32)
                    pl.BlockSpec((hc_sel, dim_p), lambda i: (0, 0)),        # W2
                    pl.BlockSpec((1, dim_p), lambda i: (0, 0)),             # b2 (f32)
                ],
                out_specs=pl.BlockSpec((tm_sel, dim_p), lambda i: (i, 0)),
            ),
            compiler_params=cparams,
        )(x2, w1cat, b1cat, w2p, b2p)
    else:
        out2 = pl.pallas_call(
            _ff_kernel_acc,
            out_shape=jax.ShapeDtypeStruct((Mp, dim_p), out_dtype),
            grid_spec=pltpu.PrefetchScalarGridSpec(
                num_scalar_prefetch=0,
                grid=(n_row, nk),
                in_specs=[
                    pl.BlockSpec((tm_sel, dim_p), lambda i, k: (i, 0)),     # x row tile
                    pl.BlockSpec((dim_p, 2 * hc_sel), lambda i, k: (0, k)), # W1 chunk
                    pl.BlockSpec((1, 2 * hc_sel), lambda i, k: (0, k)),     # b1 chunk (f32)
                    pl.BlockSpec((hc_sel, dim_p), lambda i, k: (k, 0)),     # W2 chunk
                    pl.BlockSpec((1, dim_p), lambda i, k: (0, 0)),          # b2 (f32)
                ],
                out_specs=pl.BlockSpec((tm_sel, dim_p), lambda i, k: (i, 0)),
                scratch_shapes=[pltpu.VMEM((tm_sel, dim_p), jnp.float32)],
            ),
            compiler_params=cparams,
        )(x2, w1cat, b1cat, w2p, b2p)

    return out2[:M, :dim].reshape(batch, seq, dim)


# ------------------------------------------------------------------------- reference

def feedforward_ref(x, w1, b1, w2, b2):
    """Pure-JAX reference matching the PyTorch module (f32 math)."""
    x32 = x.astype(jnp.float32)
    h = jnp.einsum("bsd,dh->bsh", x32, w1.astype(jnp.float32)) + b1.astype(jnp.float32)
    hidden = w2.shape[0]
    a, g = h[..., :hidden], h[..., hidden:]
    inner = a * _gelu_exact(g)
    return jnp.einsum("bsh,hd->bsd", inner, w2.astype(jnp.float32)) + b2.astype(jnp.float32)


if __name__ == "__main__":
    key = jax.random.PRNGKey(0)

    def make_params(k, dim, mult, dtype=jnp.float32):
        hidden = dim * mult
        k1, kb1, k2, kb2 = jax.random.split(k, 4)
        lim1 = 1.0 / math.sqrt(dim)
        w1 = jax.random.uniform(k1, (dim, hidden * 2), dtype, -lim1, lim1)
        b1 = jax.random.uniform(kb1, (hidden * 2,), dtype, -lim1, lim1)
        lim2 = 1.0 / math.sqrt(hidden)
        w2 = jax.random.uniform(k2, (hidden, dim), dtype, -lim2, lim2)
        b2 = jax.random.uniform(kb2, (dim,), dtype, -lim2, lim2)
        return w1, b1, w2, b2

    # Test 1: tiny spec-sized shapes; auto config -> weight-resident single-chunk kernel.
    kx, kp, krest = jax.random.split(key, 3)
    batch, seq, dim, mult = 2, 8, 32, 4
    x = jax.random.normal(kx, (batch, seq, dim), dtype=jnp.float32)
    w1, b1, w2, b2 = make_params(kp, dim, mult)
    out = jax.block_until_ready(feedforward(x, w1, b1, w2, b2))
    ref = feedforward_ref(x, w1, b1, w2, b2)
    assert out.shape == (batch, seq, dim)
    assert jnp.allclose(out, ref, atol=1e-5, rtol=1e-5), "mismatch vs reference (test 1)"

    # Test 2: forced small hidden chunk -> exercises the multi-chunk accumulator kernel
    # and multiple row tiles (M=320 divides tightly, no padded trailing tile).
    kx2, kp2, krest2 = jax.random.split(krest, 3)
    batch, seq, dim, mult = 2, 160, 32, 8
    x = jax.random.normal(kx2, (batch, seq, dim), dtype=jnp.float32)
    w1, b1, w2, b2 = make_params(kp2, dim, mult)
    out = jax.block_until_ready(feedforward(x, w1, b1, w2, b2, tm=256, hc=128))
    ref = feedforward_ref(x, w1, b1, w2, b2)
    assert jnp.allclose(out, ref, atol=1e-4, rtol=1e-4), "mismatch vs reference (test 2)"

    # Test 3: bf16 inputs/weights (bf16 MXU operands, f32 accumulation), auto config.
    kx3, kp3 = jax.random.split(krest2)
    batch, seq, dim, mult = 2, 64, 64, 4
    x = jax.random.normal(kx3, (batch, seq, dim), dtype=jnp.float32).astype(jnp.bfloat16)
    w1, b1, w2, b2 = make_params(kp3, dim, mult, dtype=jnp.bfloat16)
    out = jax.block_until_ready(feedforward(x, w1, b1, w2, b2))
    ref = feedforward_ref(x, w1, b1, w2, b2)
    assert jnp.allclose(out.astype(jnp.float32), ref, atol=5e-2, rtol=5e-2), \
        "mismatch vs reference (test 3)"

    print("KERNEL_OK")
</pallas_src>

<mosaic_0001>
module attributes {stable_mosaic.version = 11 : i64} {
  func.func @_ff_kernel_resident(%arg0: i32, %arg1: memref<16x128xf32, #tpu.memory_space<vmem>>, %arg2: memref<128x256xf32, #tpu.memory_space<vmem>>, %arg3: memref<1x256xf32, #tpu.memory_space<vmem>>, %arg4: memref<128x128xf32, #tpu.memory_space<vmem>>, %arg5: memref<1x128xf32, #tpu.memory_space<vmem>>, %arg6: memref<16x128xf32, #tpu.memory_space<vmem>>) attributes {dimension_semantics = [#tpu.dimension_semantics<parallel>], iteration_bounds = array<i64: 1>, scalar_prefetch = 0 : i64, scratch_operands = 0 : i64, tpu.core_type = #tpu.core_type<tc>, window_params = [{transform_indices = @transform_0, window_bounds = array<i64: 16, 128>}, {pipeline_mode = #tpu.pipeline_mode<synchronous>, transform_indices = @transform_1, window_bounds = array<i64: 128, 256>}, {pipeline_mode = #tpu.pipeline_mode<synchronous>, transform_indices = @transform_2, window_bounds = array<i64: 1, 256>}, {pipeline_mode = #tpu.pipeline_mode<synchronous>, transform_indices = @transform_3, window_bounds = array<i64: 128, 128>}, {pipeline_mode = #tpu.pipeline_mode<synchronous>, transform_indices = @transform_4, window_bounds = array<i64: 1, 128>}, {transform_indices = @transform_5, window_bounds = array<i64: 16, 128>}]} {
    %c0 = arith.constant 0 : index
    %c0_0 = arith.constant 0 : index
    %0 = vector.load %arg1[%c0, %c0_0] : memref<16x128xf32, #tpu.memory_space<vmem>>, vector<16x128xf32>
    %c0_1 = arith.constant 0 : index
    %c0_2 = arith.constant 0 : index
    %1 = vector.load %arg2[%c0_1, %c0_2] : memref<128x256xf32, #tpu.memory_space<vmem>>, vector<128x256xf32>
    %cst = arith.constant dense<0.000000e+00> : vector<16x256xf32>
    %2 = tpu.matmul %0, %1, %cst {dimension_numbers = #tpu.dot_dimension_numbers<[1], [0], [0], [1], [0, 0, 1, 1], [], []>} : vector<16x128xf32>, vector<128x256xf32>, vector<16x256xf32> -> vector<16x256xf32>
    %c0_3 = arith.constant 0 : index
    %c0_4 = arith.constant 0 : index
    %3 = vector.load %arg3[%c0_3, %c0_4] : memref<1x256xf32, #tpu.memory_space<vmem>>, vector<1x256xf32>
    %4 = vector.broadcast %3 : vector<1x256xf32> to vector<16x256xf32>
    %5 = arith.addf %2, %4 : vector<16x256xf32>
    %6 = vector.extract_strided_slice %5 {offsets = [0, 0], sizes = [16, 128], strides = [1, 1]} : vector<16x256xf32> to vector<16x128xf32>
    %7 = vector.extract_strided_slice %5 {offsets = [0, 128], sizes = [16, 128], strides = [1, 1]} : vector<16x256xf32> to vector<16x128xf32>
    %cst_5 = arith.constant 5.000000e-01 : f32
    %8 = vector.broadcast %cst_5 : f32 to vector<16x128xf32>
    %9 = arith.mulf %8, %7 : vector<16x128xf32>
    %cst_6 = arith.constant 0.707106769 : f32
    %10 = vector.broadcast %cst_6 : f32 to vector<16x128xf32>
    %11 = arith.mulf %7, %10 : vector<16x128xf32>
    %12 = math.erf %11 : vector<16x128xf32>
    %cst_7 = arith.constant 1.000000e+00 : f32
    %13 = vector.broadcast %cst_7 : f32 to vector<16x128xf32>
    %14 = arith.addf %13, %12 : vector<16x128xf32>
    %15 = arith.mulf %9, %14 : vector<16x128xf32>
    %16 = arith.mulf %6, %15 : vector<16x128xf32>
    %c0_8 = arith.constant 0 : index
    %c0_9 = arith.constant 0 : index
    %17 = vector.load %arg4[%c0_8, %c0_9] : memref<128x128xf32, #tpu.memory_space<vmem>>, vector<128x128xf32>
    %cst_10 = arith.constant dense<0.000000e+00> : vector<16x128xf32>
    %18 = tpu.matmul %16, %17, %cst_10 {dimension_numbers = #tpu.dot_dimension_numbers<[1], [0], [0], [1], [0, 0, 1, 1], [], []>} : vector<16x128xf32>, vector<128x128xf32>, vector<16x128xf32> -> vector<16x128xf32>
    %c0_11 = arith.constant 0 : index
    %c0_12 = arith.constant 0 : index
    %19 = vector.load %arg5[%c0_11, %c0_12] : memref<1x128xf32, #tpu.memory_space<vmem>>, vector<1x128xf32>
    %20 = vector.broadcast %19 : vector<1x128xf32> to vector<16x128xf32>
    %21 = arith.addf %18, %20 : vector<16x128xf32>
    %c0_13 = arith.constant 0 : index
    %c0_14 = arith.constant 0 : index
    %22 = vector.load %arg6[%c0_13, %c0_14] : memref<16x128xf32, #tpu.memory_space<vmem>>, vector<16x128xf32>
    tpu.vector_store %arg6[%c0_13, %c0_14], %21 {strides = array<i32>} : memref<16x128xf32, #tpu.memory_space<vmem>>, vector<16x128xf32>,
    return
  }
  func.func @transform_0(%arg0: i32) -> (i32, i32) {
    %c0_i32 = arith.constant 0 : i32
    %c0_i32_0 = arith.constant 0 : i32
    return %arg0, %c0_i32 : i32, i32
  }
  func.func @transform_1(%arg0: i32) -> (i32, i32) {
    %c0_i32 = arith.constant 0 : i32
    %c0_i32_0 = arith.constant 0 : i32
    %c0_i32_1 = arith.constant 0 : i32
    return %c0_i32, %c0_i32_0 : i32, i32
  }
  func.func @transform_2(%arg0: i32) -> (i32, i32) {
    %c0_i32 = arith.constant 0 : i32
    %c0_i32_0 = arith.constant 0 : i32
    %c0_i32_1 = arith.constant 0 : i32
    return %c0_i32, %c0_i32_0 : i32, i32
  }
  func.func @transform_3(%arg0: i32) -> (i32, i32) {
    %c0_i32 = arith.constant 0 : i32
    %c0_i32_0 = arith.constant 0 : i32
    %c0_i32_1 = arith.constant 0 : i32
    return %c0_i32, %c0_i32_0 : i32, i32
  }
  func.func @transform_4(%arg0: i32) -> (i32, i32) {
    %c0_i32 = arith.constant 0 : i32
    %c0_i32_0 = arith.constant 0 : i32
    %c0_i32_1 = arith.constant 0 : i32
    return %c0_i32, %c0_i32_0 : i32, i32
  }
  func.func @transform_5(%arg0: i32) -> (i32, i32) {
    %c0_i32 = arith.constant 0 : i32
    %c0_i32_0 = arith.constant 0 : i32
    return %arg0, %c0_i32 : i32, i32
  }
}

</mosaic_0001>

<bundles_post_ra>
// kernel: tpu_custom_call.1
= control target key start
LH: loop header
LB: loop body
LE: loop exit
PB: predicated region body
PF: predicated region fallthrough
CT: control target
= control target key end

     0   :  { %10 = vsyncpa [#allocation3], 0  ;;  %s644_s0 = inlined_call_operand.hbm [shape: f32[16,128], index: 0, kind: input, shape index: {}]   ;;  %s645_s1 = inlined_call_operand.hbm [shape: f32[128,256], index: 1, kind: input, shape index: {}]   ;;  %s646_s2 = inlined_call_operand.vmem [shape: f32[1,256], index: 2, kind: input, shape index: {}]   ;;  %s647_s3 = inlined_call_operand.hbm [shape: f32[128,128], index: 3, kind: input, shape index: {}]   ;;  %s648_s4 = inlined_call_operand.vmem [shape: f32[1,128], index: 4, kind: input, shape index: {}]   ;;  %s649_s5 = inlined_call_operand.hbm [shape: f32[16,128], index: 5, kind: output, shape index: {}]  }
   0x1   :  { %11 = vsyncpa [#allocation6], 0 }
   0x2   :  { %12 = vsyncpa [#allocation4], 0  ;;  %s540_s18 = smov [#allocation5]   ;;  %s446_s22 = scalar_lea.hbm %s645_s1, 4096 }
   0x3   :  { %s30_s19 = sshll.u32 %s540_s18, 4  ;;  %p447_p0 = scmp.ne.s32.totalorder %s645_s1, %s446_s22  ;;  %s31_s19 = int_to_ptr.vmem [resolvable:$true] %s30_s19 }
   0x4   :  { %p450_p1 = scmp.lt.u32.totalorder %s446_s22, %s645_s1 }
   0x6   :  { %p452_p2 = pnand %p450_p1, %p447_p0 }
   0x8   :  { %455 = shalt.err (!%p452_p2)
}
   0x9   :  { %s456_s27 = scalar_lea.vmem %s31_s19, 4096  ;;  %p461_p4 = scmp.lt.s32.totalorder %s31_s19, %s31_s19 }
   0xa   :  { %p457_p3 = scmp.ne.s32.totalorder %s31_s19, %s456_s27  ;;  %p462_p5 = scmp.lt.s32.totalorder %s456_s27, %s456_s27 }
   0xc   :  { %p463_p6 = por %p462_p5, %p461_p4 }
   0xe   :  { %p464_p7 = pnand %p463_p6, %p457_p3 }
  0x10   :  { %467 = shalt.err (!%p464_p7)
}
  0x11   :  { %s541_s28 = smov 256   ;;  %s542_s29 = smov 16  }
  0x12   :  { %36 = dma.hbm_to_vmem [thread:$0]  %s645_s1, 4096, %s31_s19, [#allocation6], %s541_s28, %s541_s28, %s542_s29  }
  0x13   :  { %s543_s7 = smov [#allocation2]   ;;  %s468_s11 = scalar_lea.hbm %s644_s0, 256 }
  0x14   :  { %s18_s8 = sshll.u32 %s543_s7, 4  ;;  %p469_p8 = scmp.ne.s32.totalorder %s644_s0, %s468_s11  ;;  %s19_s8 = int_to_ptr.vmem [resolvable:$true] %s18_s8 }
  0x15   :  { %p472_p9 = scmp.lt.u32.totalorder %s468_s11, %s644_s0 }
  0x17   :  { %p474_p10 = pnand %p472_p9, %p469_p8 }
  0x19   :  { %477 = shalt.err (!%p474_p10)
}
  0x1a   :  { %s478_s16 = scalar_lea.vmem %s19_s8, 256  ;;  %p483_p12 = scmp.lt.s32.totalorder %s19_s8, %s19_s8 }
  0x1b   :  { %p479_p11 = scmp.ne.s32.totalorder %s19_s8, %s478_s16  ;;  %p484_p13 = scmp.lt.s32.totalorder %s478_s16, %s478_s16 }
  0x1d   :  { %p485_p0 = por %p484_p13, %p483_p12 }
  0x1f   :  { %p486_p1 = pnand %p485_p0, %p479_p11 }
  0x21   :  { %489 = shalt.err (!%p486_p1)
}
  0x22   :  { %s544_s1 = smov 128   ;;  %s545_s17 = smov 8  }
  0x23   :  { %24 = dma.hbm_to_vmem [thread:$0]  %s644_s0, 256, %s19_s8, [#allocation3], %s544_s1, %s544_s1, %s545_s17  }
  0x24   :  { %s546_s20 = smov [#allocation7]   ;;  %s490_s24 = scalar_lea.hbm %s647_s3, 2048 }
  0x25   :  { %s44_s21 = sshll.u32 %s546_s20, 4  ;;  %p491_p2 = scmp.ne.s32.totalorder %s647_s3, %s490_s24  ;;  %s45_s21 = int_to_ptr.vmem [resolvable:$true] %s44_s21 }
  0x26   :  { %p494_p3 = scmp.lt.u32.totalorder %s490_s24, %s647_s3 }
  0x28   :  { %p496_p4 = pnand %p494_p3, %p491_p2 }
  0x2a   :  { %499 = shalt.err (!%p496_p4)
}
  0x2b   :  { %s500_s29 = scalar_lea.vmem %s45_s21, 2048  ;;  %p505_p6 = scmp.lt.s32.totalorder %s45_s21, %s45_s21 }
  0x2c   :  { %p501_p5 = scmp.ne.s32.totalorder %s45_s21, %s500_s29  ;;  %p506_p7 = scmp.lt.s32.totalorder %s500_s29, %s500_s29 }
  0x2e   :  { %p507_p8 = por %p506_p7, %p505_p6 }
  0x30   :  { %p508_p9 = pnand %p507_p8, %p501_p5 }
  0x32   :  { %511 = shalt.err (!%p508_p9)
}
  0x33   :  { %50 = dma.hbm_to_vmem [thread:$0]  %s647_s3, 2048, %s45_s21, [#allocation6], %s544_s1, %s544_s1, %s545_s17  }
  0x34   :  { %534 = dma.done.wait [#allocation3], 256  }
  0x35   :  { %535 = vsyncadd [#allocation3], 4294967040 }
  0x36   :  { %536 = dma.done.wait [#allocation6], 6144  }
  0x37   :  { %537 = vsyncadd [#allocation6], 4294961152  ;;  %v547_v0 = vmov 0.0   ;;  %v65_v1 = vld [vmem:[#allocation5 + $0x8] sm:$0xff]  ;;  %v67_v2 = vld [vmem:[#allocation5 + $0x18] sm:$0xff]  ;;  %s548_s8 = smov [#allocation8]  }
  0x38   :  { %172 = vmatprep.mubr.f32.mxu0 %v547_v0  ;;  %v64_v3 = vld [vmem:[#allocation5] sm:$0xff]  ;;  %v369_v4 = vpack.c.bf16 %v67_v2, %v65_v1  ;;  %v66_v5 = vld [vmem:[#allocation5 + $0x10] sm:$0xff]  ;;  %v69_v6 = vld [vmem:[#allocation5 + $0x28] sm:$0xff]  ;;  %s302_s9 = sshll.u32 %s548_s8, 4  ;;  %s303_s9 = int_to_ptr.vmem [resolvable:$true] %s302_s9 }
  0x39   :  { %v71_v7 = vld [vmem:[#allocation5 + $0x38] sm:$0xff]  ;;  %v371_v8 = vpack.c.bf16 %v66_v5, %v64_v3  ;;  %v68_v10 = vld [vmem:[#allocation5 + $0x20] sm:$0xff]  ;;  %v70_v11 = vld [vmem:[#allocation5 + $0x30] sm:$0xff]  ;;  %s512_s10 = scalar_lea.vmem %s303_s9, 256  ;;  %p517_p11 = scmp.lt.s32.totalorder %s303_s9, %s303_s9 }
  0x3a   :  { %v373_v9 = vpack.c.bf16 %v71_v7, %v69_v6  ;;  %v73_v12 = vld [vmem:[#allocation5 + $0x48] sm:$0xff]  ;;  %370 = vmatprep.subr.bf16.mxu0 %v369_v4  ;;  %v75_v13 = vld [vmem:[#allocation5 + $0x58] sm:$0xff]  ;;  %v375_v14 = vpack.c.bf16 %v70_v11, %v68_v10  ;;  %v72_v16 = vld [vmem:[#allocation5 + $0x40] sm:$0xff]  ;;  %v98_v11 = vlaneseq  ;;  %p513_p10 = scmp.ne.s32.totalorder %s303_s9, %s512_s10  ;;  %p518_p12 = scmp.lt.s32.totalorder %s512_s10, %s512_s10 }
  0x3b   :  { %372 = vmatpush1.bf16.msra.mxu0 %v371_v8  ;;  %v377_v15 = vpack.c.bf16 %v75_v13, %v73_v12  ;;  %v74_v17 = vld [vmem:[#allocation5 + $0x50] sm:$0xff]  ;;  %v77_v18 = vld [vmem:[#allocation5 + $0x68] sm:$0xff]  ;;  %v79_v19 = vld [vmem:[#allocation5 + $0x78] sm:$0xff] }
  0x3c   :  { %374 = vmatprep.subr.bf16.mxu0 %v373_v9  ;;  %v379_v20 = vpack.c.bf16 %v74_v17, %v72_v16  ;;  %v381_v21 = vpack.c.bf16 %v79_v19, %v77_v18  ;;  %v76_v22 = vld [vmem:[#allocation5 + $0x60] sm:$0xff]  ;;  %v78_v23 = vld [vmem:[#allocation5 + $0x70] sm:$0xff]  ;;  %v81_v24 = vld [vmem:[#allocation5 + $0x88] sm:$0xff]  ;;  %v99_v12 = vshrl.u32 %v98_v11, 7  ;;  %p519_p13 = por %p518_p12, %p517_p11 }
  0x3d   :  { %v83_v25 = vld [vmem:[#allocation5 + $0x98] sm:$0xff]  ;;  %v197_v26 = vld [vmem:[#allocation7] sm:$0xff]  ;;  %v198_v27 = vld [vmem:[#allocation7 + $0x8] sm:$0xff]  ;;  %v383_v28 = vpack.c.bf16 %v78_v23, %v76_v22 }
  0x3e   :  { %v401_v29 = vpack.c.bf16 %v198_v27, %v197_v26  ;;  %v199_v30 = vld [vmem:[#allocation7 + $0x10] sm:$0xff]  ;;  %v200_v31 = vld [vmem:[#allocation7 + $0x18] sm:$0xff]  ;;  %v385_v32 = vpack.c.bf16 %v83_v25, %v81_v24  ;;  %v80_v33 = vld [vmem:[#allocation5 + $0x80] sm:$0xff]  ;;  %v104_v13 = vsub.s32 1, %v99_v12  ;;  %v100_v24 = vsub.s32 0, %v99_v12  ;;  %p520_p0 = pnand %p519_p13, %p513_p10 }
  0x3f   :  { %376 = vmatpush1.bf16.msra.mxu0 %v375_v14  ;;  %v82_v34 = vld [vmem:[#allocation5 + $0x90] sm:$0xff]  ;;  %v405_v35 = vpack.c.bf16 %v200_v31, %v199_v30  ;;  %v85_v36 = vld [vmem:[#allocation5 + $0xa8] sm:$0xff]  ;;  %v87_v37 = vld [vmem:[#allocation5 + $0xb8] sm:$0xff] }
  0x40   :  { %378 = vmatprep.subr.bf16.mxu0 %v377_v15  ;;  %402 = vmatprep.subr.bf16.mxu1 %v401_v29  ;;  %v387_v38 = vpack.c.bf16 %v82_v34, %v80_v33  ;;  %v389_v39 = vpack.c.bf16 %v87_v37, %v85_v36  ;;  %v84_v40 = vld [vmem:[#allocation5 + $0xa0] sm:$0xff]  ;;  %v86_v41 = vld [vmem:[#allocation5 + $0xb0] sm:$0xff]  ;;  %v89_v42 = vld [vmem:[#allocation5 + $0xc8] sm:$0xff] }
  0x41   :  { %404 = vmatpush3.bf16.msra.mxu1 %v401_v29  ;;  %v91_v43 = vld [vmem:[#allocation5 + $0xd8] sm:$0xff]  ;;  %v391_v44 = vpack.c.bf16 %v86_v41, %v84_v40  ;;  %v88_v46 = vld [vmem:[#allocation5 + $0xc0] sm:$0xff]  ;;  %v90_v47 = vld [vmem:[#allocation5 + $0xd0] sm:$0xff] }
  0x42   :  { %406 = vmatprep.subr.bf16.mxu1 %v405_v35  ;;  %v393_v45 = vpack.c.bf16 %v91_v43, %v89_v42  ;;  %v93_v48 = vld [vmem:[#allocation5 + $0xe8] sm:$0xff]  ;;  %v95_v49 = vld [vmem:[#allocation5 + $0xf8] sm:$0xff]  ;;  %v395_v50 = vpack.c.bf16 %v90_v47, %v88_v46  ;;  %v92_v52 = vld [vmem:[#allocation5 + $0xe0] sm:$0xff] }
  0x43   :  { %380 = vmatpush1.bf16.msra.mxu0 %v379_v20  ;;  %v397_v51 = vpack.c.bf16 %v95_v49, %v93_v48  ;;  %v94_v53 = vld [vmem:[#allocation5 + $0xf0] sm:$0xff]  ;;  %v63_v56 = vld [vmem:[#allocation2 + $0x8] sm:$0xff]  ;;  %v201_v57 = vld [vmem:[#allocation7 + $0x20] sm:$0xff] }
  0x44   :  { %382 = vmatprep.subr.bf16.mxu0 %v381_v21  ;;  %v399_v54 = vpack.c.bf16 %v94_v53, %v92_v52  ;;  %v62_v55 = vld [vmem:[#allocation2] sm:$0xff]  ;;  %v202_v58 = vld [vmem:[#allocation7 + $0x28] sm:$0xff]  ;;  %v204_v61 = vld [vmem:[#allocation7 + $0x38] sm:$0xff] }
  0x45   :  { %408 = vmatpush3.bf16.msra.mxu1 %v405_v35  ;;  %v409_v59 = vpack.c.bf16 %v202_v58, %v201_v57  ;;  %v203_v60 = vld [vmem:[#allocation7 + $0x30] sm:$0xff]  ;;  %v205_v63 = vld [vmem:[#allocation7 + $0x40] sm:$0xff]  ;;  %v206_v1 = vld [vmem:[#allocation7 + $0x48] sm:$0xff] }
  0x46   :  { %v413_v62 = vpack.c.bf16 %v204_v61, %v203_v60  ;;  %v417_v2 = vpack.c.bf16 %v206_v1, %v205_v63  ;;  %v207_v3 = vld [vmem:[#allocation7 + $0x50] sm:$0xff]  ;;  %v208_v4 = vld [vmem:[#allocation7 + $0x58] sm:$0xff]  ;;  %v209_v5 = vld [vmem:[#allocation7 + $0x60] sm:$0xff] }
  0x47   :  { %384 = vmatpush1.bf16.msra.mxu0 %v383_v28  ;;  %410 = vmatprep.subr.bf16.mxu1 %v409_v59  ;;  %v210_v6 = vld [vmem:[#allocation7 + $0x68] sm:$0xff]  ;;  %v211_v8 = vld [vmem:[#allocation7 + $0x70] sm:$0xff]  ;;  %v212_v9 = vld [vmem:[#allocation7 + $0x78] sm:$0xff] }
  0x48   :  { %386 = vmatprep.subr.bf16.mxu0 %v385_v32  ;;  %v425_v7 = vpack.c.bf16 %v210_v6, %v209_v5  ;;  %v429_v10 = vpack.c.bf16 %v212_v9, %v211_v8  ;;  %v96_v14 = vld [vmem:[%s646_s2] sm:$0x3] }
  0x49   :  { %412 = vmatpush3.bf16.msra.mxu1 %v409_v59  ;;  %v105_v15 = vrot.slane %v96_v14, %v104_v13  ;;  %v101_v25 = vrot.slane %v96_v14, %v100_v24 }
  0x4a   :  { %414 = vmatprep.subr.bf16.mxu1 %v413_v62 }
  0x4b   :  { %388 = vmatpush1.bf16.msra.mxu0 %v387_v38  ;;  %v315_v38 = vld [vmem:[%s648_s4] ss:$0 sm:$0xff] }
  0x4c   :  { %390 = vmatprep.subr.bf16.mxu0 %v389_v39 }
  0x4d   :  { %416 = vmatpush3.bf16.msra.mxu1 %v413_v62 }
  0x4e   :  { %418 = vmatprep.subr.bf16.mxu1 %v417_v2 }
  0x4f   :  { %392 = vmatpush1.bf16.msra.mxu0 %v391_v44 }
  0x50   :  { %394 = vmatprep.subr.bf16.mxu0 %v393_v45 }
  0x51   :  { %420 = vmatpush3.bf16.msra.mxu1 %v417_v2 }
  0x53   :  { %396 = vmatpush1.bf16.msra.mxu0 %v395_v50 }
  0x54   :  { %398 = vmatprep.subr.bf16.mxu0 %v397_v51 }
  0x57   :  { %400 = vmatpush1.bf16.msra.mxu0 %v399_v54 }
  0x5a   :  { %173 = vmatmul.mubr.f32.vlgmr.msra.gmra.mrb[0].mxu0 %v62_v55 }
  0x5b   :  { %178 = vmatprep.mubr.f32.mxu0 %v547_v0  ;;  %v421_v0 = vpack.c.bf16 %v208_v4, %v207_v3 }
  0x5d   :  { %422 = vmatprep.subr.bf16.mxu1 %v421_v0 }
  0x5e   :  { %179 = vmatmul.mubr.f32.gmra.mrb[2].mxu0 %v63_v56  ;;  %424 = vmatpush3.bf16.msra.mxu1 %v421_v0 }
  0x5f   :  { %426 = vmatprep.subr.bf16.mxu1 %v425_v7 }
  0x62   :  { %428 = vmatpush3.bf16.msra.mxu1 %v425_v7 }
  0x63   :  { %430 = vmatprep.subr.bf16.mxu1 %v429_v10 }
  0x66   :  { %432 = vmatpush3.bf16.msra.mxu1 %v429_v10 }
 0x12d   :  { %v174_v16 = vpop.f32.mrb[0].mxu0 }
 0x12e   :  { %v176_v17 = vpop.f32.mrb[1].mxu0  ;;  %v175_v29 = vadd.f32 %v174_v16, %v101_v25 }
 0x12f   :  { %v177_v18 = vadd.f32 %v176_v17, %v105_v15 }
 0x131   :  { %v187_v19 = vmul.f32 0.70710677, %v177_v18  ;;  %v180_v20 = vpop.f32.mrb[2].mxu0  ;;  %v185_v27 = vmul.f32 0.5, %v177_v18 }
 0x132   :  { %v182_v21 = vpop.f32.mrb[3].mxu0  ;;  %v181_v35 = vadd.f32 %v180_v20, %v101_v25 }
 0x133   :  { %442 = verf.f32 %v187_v19  ;;  %v183_v22 = vadd.f32 %v182_v21, %v105_v15 }
 0x135   :  { %v188_v23 = vmul.f32 0.70710677, %v183_v22  ;;  %v186_v32 = vmul.f32 0.5, %v183_v22 }
 0x137   :  { %444 = verf.f32 %v188_v23 }
 0x13d   :  { %v443_v26 = vpop.eup %442 }
 0x13e   :  { %v191_v28 = vadd.f32 1.0, %v443_v26 }
 0x140   :  { %v193_v30 = vmul.f32 %v191_v28, %v185_v27 }
 0x141   :  { %v445_v31 = vpop.eup %444 }
 0x142   :  { %v192_v33 = vadd.f32 1.0, %v445_v31  ;;  %v195_v34 = vmul.f32 %v193_v30, %v175_v29 }
 0x144   :  { %v194_v36 = vmul.f32 %v192_v33, %v186_v32  ;;  %366 = vmatprep.mubr.f32.mxu1 %v195_v34 }
 0x146   :  { %v196_v37 = vmul.f32 %v194_v36, %v181_v35 }
 0x148   :  { %367 = vmatmul.mubr.f32.vlgmr.msra.gmra.mrb[0].mxu1 %v196_v37 }
 0x21b   :  { %v368_v39 = vpop.f32.mrb[0].mxu1 }
 0x21c   :  { %v292_v40 = vadd.f32 %v368_v39, %v315_v38  ;;  %v286_v41 = vpop.f32.mrb[1].mxu1 }
 0x21d   :  { %v287_v42 = vadd.f32 %v315_v38, %v286_v41 }
 0x21e   :  { %296 = vst [vmem:[#allocation8 + $0x8] sm:$0xff] %v292_v40 }
 0x21f   :  { %295 = vst [vmem:[#allocation8] sm:$0xff] %v287_v42 }
 0x220   :  { %523 = shalt.err (!%p520_p0)
}
 0x221   :  { %s524_s4 = scalar_lea.hbm %s649_s5, 256 }
 0x222   :  { %p525_p1 = scmp.ne.s32.totalorder %s649_s5, %s524_s4  ;;  %p528_p2 = scmp.lt.u32.totalorder %s524_s4, %s649_s5 }
 0x224   :  { %p530_p3 = pnand %p528_p2, %p525_p1 }
 0x226   :  { %533 = shalt.err (!%p530_p3)
}
 0x227   :  { %308 = dma.vmem_to_hbm [thread:$0]  %s303_s9, 256, %s649_s5, [#allocation4], %s544_s1, %s544_s1, %s545_s17  }
 0x228   :  { %538 = dma.done.wait [#allocation4], 256  }
 0x229   :  { %539 = vsyncadd [#allocation4], 4294967040 }
 0x22a   :  { %312 = vsyncpa [#allocation3], 1 }
 0x22b   :  { %313 = vsyncpa [#allocation6], 1 }
 0x22c   :  { %314 = vsyncpa [#allocation4], 1 }

</bundles_post_ra>
